<compile_context>
chip_gen: v5e
topology: v5e:2x2
jax: 0.10.0
libtpu: 0.0.40
codegen_flags: <defaults>
</compile_context>

<pallas_src>
import jax
import jax.numpy as jnp
import numpy as np
from jax.experimental import pallas as pl
from jax.experimental.pallas import tpu as pltpu


def _round_up(a, m):
    return (a + m - 1) // m * m


def _vmem_limit_bytes(n, d, tile_t):
    """Rough VMEM footprint (lane-padded) + headroom for the compiler limit."""
    lane = 128
    n_p = _round_up(max(n, 1), lane)
    d_p = _round_up(max(d, 1), lane)
    n_s = _round_up(max(n, 1), 8)
    need = (
        2 * n_s * d_p * 4            # resident features (double-buffered blocks)
        + 3 * tile_t * n_p * 4       # fused one-hot (matmul LHS)
        + 2 * 3 * tile_t * d_p * 4   # gathered rows + elementwise temps
        + 2 * 3 * tile_t * lane * 4  # streamed index blocks (lane-padded)
        + 2 * tile_t * lane * 4      # output blocks (lane-padded)
    )
    return int(min(max(int(need * 1.5), 4 * 2**20), 100 * 2**20))


def _triplet_margin_kernel(x_ref, idx_ref, o_ref):
    """x_ref:  (N, d) f32 features, resident for every grid step.
    idx_ref: (3*tile_t, 1) i32 row ids for this tile, grouped [i..., j..., k...].
    o_ref:   (tile_t, 1) f32 per-triplet softplus(d_ij - d_ik)."""
    n = x_ref.shape[0]
    tt3 = idx_ref.shape[0]
    tile_t = tt3 // 3

    # Fused one-hot gather: one (3*tile_t, N) one-hot, one MXU push gathers the
    # anchor/positive/negative rows of the whole tile at once.
    col_iota = jax.lax.broadcasted_iota(jnp.int32, (tt3, n), 1)
    onehot = (col_iota == idx_ref[...]).astype(jnp.float32)
    g = jnp.dot(onehot, x_ref[...], preferred_element_type=jnp.float32)

    g_i = g[0:tile_t, :]
    g_j = g[tile_t:2 * tile_t, :]
    g_k = g[2 * tile_t:3 * tile_t, :]

    # d_ij - d_ik with a single lane-axis reduction (both squared distances are
    # >= 0 by construction, so the reference's clamp(., 0, inf) is implied).
    diff = (g_i - g_j) ** 2 - (g_i - g_k) ** 2
    margin = jnp.sum(diff, axis=1, keepdims=True)            # (tile_t, 1)

    # Numerically stable softplus: log(1 + exp(margin)).
    o_ref[...] = jnp.logaddexp(jnp.float32(0.0), margin)


def triplet_loss(features, triplets, tile_t=256):
    """features: (N, d) float32; triplets: (T, 3) int of (i, j, k) indices.
    Returns a (1,) float32 array (matches torch.FloatTensor([loss]))."""
    features = jnp.asarray(features, jnp.float32)
    triplets = jnp.asarray(triplets, jnp.int32)
    n, d = features.shape
    t_true = int(triplets.shape[0])
    if t_true == 0:
        # Reference would compute 0/0; guard instead of producing NaN.
        return jnp.zeros((1,), jnp.float32)

    if t_true <= tile_t:
        tile_t_eff = max(_round_up(t_true, 8), 8)
    else:
        tile_t_eff = _round_up(tile_t, 128)
    t_pad = _round_up(t_true, tile_t_eff)
    num_tiles = t_pad // tile_t_eff

    # Padded triplets point at row 0 (their softplus(0)=log 2 is sliced away
    # below, so no in-kernel mask is needed).  Per tile the indices are grouped
    # along sublanes as [i_0..i_{tile-1}, j_0.., k_0..] so the kernel can build
    # one fused (3*tile_t, N) one-hot and slice the gathered block afterwards.
    tr_pad = jnp.zeros((t_pad, 3), jnp.int32).at[:t_true, :].set(triplets)
    idx = (tr_pad.reshape(num_tiles, tile_t_eff, 3)
                 .transpose(0, 2, 1)
                 .reshape(num_tiles * 3 * tile_t_eff, 1))

    per_triplet = pl.pallas_call(
        _triplet_margin_kernel,
        out_shape=jax.ShapeDtypeStruct((t_pad, 1), jnp.float32),
        grid=(num_tiles,),
        in_specs=[
            # Resident features: index map never moves, whole array in VMEM.
            pl.BlockSpec((n, d), lambda t: (0, 0)),
            # Streamed per-tile index column (3*tile_t rows, double-buffered).
            pl.BlockSpec((3 * tile_t_eff, 1), lambda t: (t, 0)),
        ],
        out_specs=pl.BlockSpec((tile_t_eff, 1), lambda t: (t, 0)),
        compiler_params=pltpu.CompilerParams(
            dimension_semantics=("parallel",),
            vmem_limit_bytes=_vmem_limit_bytes(n, d, tile_t_eff),
        ),
    )(features, idx)

    # Final mask + mean outside the kernel: keeps the grid axis embarrassingly
    # parallel (both v7x TensorCores) and avoids a serial (1,1) accumulator.
    loss = jnp.sum(per_triplet[:t_true, 0]) / jnp.float32(t_true)
    return loss.reshape((1,))


def _reference_loss(features, triplets):
    # float64 + stable softplus so the reference itself does not overflow.
    x = np.asarray(features, dtype=np.float64)
    xn = (x ** 2).sum(1)
    dist = xn[:, None] + xn[None, :] - 2.0 * (x @ x.T)
    dist = np.clip(dist, 0.0, np.inf)
    tr = np.asarray(triplets)
    m = dist[tr[:, 0], tr[:, 1]] - dist[tr[:, 0], tr[:, 2]]
    return np.float32(np.logaddexp(0.0, m).mean())


if __name__ == "__main__":
    key = jax.random.PRNGKey(0)
    N, d = 16, 32

    kx, kt = jax.random.split(key)
    x = 0.5 * jax.random.normal(kx, (N, d), dtype=jnp.float32)

    # Exercise both the single-tile path (T=5, padded, sliced in the wrapper)
    # and the multi-tile parallel-grid path (T=300 -> 2 tiles of 256).
    for T in (5, 300):
        ktt = jax.random.fold_in(kt, T)
        trips = jax.random.randint(ktt, (T, 3), 0, N, dtype=jnp.int32)

        loss = triplet_loss(x, trips)
        jax.block_until_ready(loss)

        ref = _reference_loss(np.array(x), np.array(trips))
        got = np.array(loss)[0]
        assert loss.shape == (1,), loss.shape
        assert np.allclose(got, ref, rtol=1e-4, atol=1e-5), (T, got, ref)

    print("KERNEL_OK")
</pallas_src>

<mosaic_0001>
module attributes {stable_mosaic.version = 11 : i64} {
  func.func @_triplet_margin_kernel(%arg0: i32, %arg1: memref<16x32xf32, #tpu.memory_space<vmem>>, %arg2: memref<24x1xi32, #tpu.memory_space<vmem>>, %arg3: memref<8x1xf32, #tpu.memory_space<vmem>>) attributes {dimension_semantics = [#tpu.dimension_semantics<parallel>], iteration_bounds = array<i64: 1>, scalar_prefetch = 0 : i64, scratch_operands = 0 : i64, tpu.core_type = #tpu.core_type<tc>, window_params = [{pipeline_mode = #tpu.pipeline_mode<synchronous>, transform_indices = @transform_0, window_bounds = array<i64: 16, 32>}, {transform_indices = @transform_1, window_bounds = array<i64: 24, 1>}, {transform_indices = @transform_2, window_bounds = array<i64: 8, 1>}]} {
    %0 = tpu.iota {dimensions = array<i32: 1>} : vector<24x16xi32>
    %c0 = arith.constant 0 : index
    %c0_0 = arith.constant 0 : index
    %1 = vector.load %arg2[%c0, %c0_0] : memref<24x1xi32, #tpu.memory_space<vmem>>, vector<24x1xi32>
    %2 = vector.broadcast %1 : vector<24x1xi32> to vector<24x16xi32>
    %3 = arith.cmpi eq, %0, %2 : vector<24x16xi32>
    %4 = arith.extui %3 : vector<24x16xi1> to vector<24x16xi32>
    %5 = arith.sitofp %4 : vector<24x16xi32> to vector<24x16xf32>
    %c0_1 = arith.constant 0 : index
    %c0_2 = arith.constant 0 : index
    %6 = vector.load %arg1[%c0_1, %c0_2] : memref<16x32xf32, #tpu.memory_space<vmem>>, vector<16x32xf32>
    %cst = arith.constant dense<0.000000e+00> : vector<24x32xf32>
    %7 = tpu.matmul %5, %6, %cst {dimension_numbers = #tpu.dot_dimension_numbers<[1], [0], [0], [1], [0, 0, 1, 1], [], []>} : vector<24x16xf32>, vector<16x32xf32>, vector<24x32xf32> -> vector<24x32xf32>
    %8 = vector.extract_strided_slice %7 {offsets = [0, 0], sizes = [8, 32], strides = [1, 1]} : vector<24x32xf32> to vector<8x32xf32>
    %9 = vector.extract_strided_slice %7 {offsets = [8, 0], sizes = [8, 32], strides = [1, 1]} : vector<24x32xf32> to vector<8x32xf32>
    %10 = vector.extract_strided_slice %7 {offsets = [16, 0], sizes = [8, 32], strides = [1, 1]} : vector<24x32xf32> to vector<8x32xf32>
    %11 = arith.subf %8, %9 : vector<8x32xf32>
    %12 = arith.mulf %11, %11 : vector<8x32xf32>
    %13 = arith.subf %8, %10 : vector<8x32xf32>
    %14 = arith.mulf %13, %13 : vector<8x32xf32>
    %15 = arith.subf %12, %14 : vector<8x32xf32>
    %cst_3 = arith.constant dense<0.000000e+00> : vector<8xf32>
    %16 = vector.multi_reduction <add>, %15, %cst_3 [1] : vector<8x32xf32> to vector<8xf32>
    %17 = vector.shape_cast %16 : vector<8xf32> to vector<8x1xf32>
    %cst_4 = arith.constant 0.000000e+00 : f32
    %18 = vector.broadcast %cst_4 : f32 to vector<8x1xf32>
    %19 = arith.maximumf %18, %17 : vector<8x1xf32>
    %20 = vector.broadcast %cst_4 : f32 to vector<8x1xf32>
    %21 = arith.subf %20, %17 : vector<8x1xf32>
    %22 = arith.cmpf one, %21, %21 : vector<8x1xf32>
    %23 = vector.broadcast %cst_4 : f32 to vector<8x1xf32>
    %24 = arith.addf %23, %17 : vector<8x1xf32>
    %25 = math.absf %21 : vector<8x1xf32>
    %cst_5 = arith.constant 0.000000e+00 : f32
    %26 = vector.broadcast %cst_5 : f32 to vector<8x1xf32>
    %27 = arith.subf %26, %25 : vector<8x1xf32>
    %28 = math.exp %27 : vector<8x1xf32>
    %29 = math.log1p %28 : vector<8x1xf32>
    %30 = arith.addf %19, %29 : vector<8x1xf32>
    %31 = arith.select %22, %24, %30 : vector<8x1xi1>, vector<8x1xf32>
    %c0_6 = arith.constant 0 : index
    %c0_7 = arith.constant 0 : index
    %32 = vector.load %arg3[%c0_6, %c0_7] : memref<8x1xf32, #tpu.memory_space<vmem>>, vector<8x1xf32>
    tpu.vector_store %arg3[%c0_6, %c0_7], %31 {strides = array<i32>} : memref<8x1xf32, #tpu.memory_space<vmem>>, vector<8x1xf32>,
    return
  }
  func.func @transform_0(%arg0: i32) -> (i32, i32) {
    %c0_i32 = arith.constant 0 : i32
    %c0_i32_0 = arith.constant 0 : i32
    %c0_i32_1 = arith.constant 0 : i32
    return %c0_i32, %c0_i32_0 : i32, i32
  }
  func.func @transform_1(%arg0: i32) -> (i32, i32) {
    %c0_i32 = arith.constant 0 : i32
    %c0_i32_0 = arith.constant 0 : i32
    return %arg0, %c0_i32 : i32, i32
  }
  func.func @transform_2(%arg0: i32) -> (i32, i32) {
    %c0_i32 = arith.constant 0 : i32
    %c0_i32_0 = arith.constant 0 : i32
    return %arg0, %c0_i32 : i32, i32
  }
}

</mosaic_0001>

<bundles_post_ra>
// kernel: tpu_custom_call.1
= control target key start
LH: loop header
LB: loop body
LE: loop exit
PB: predicated region body
PF: predicated region fallthrough
CT: control target
= control target key end

     0   :  { %v124_v0 = vmov 0   ;;  %v11_v6 = vlaneseq  ;;  %vm36_vm0 = vcmask 130048   ;;  %v125_v10 = vmov 0.0   ;;  %s159_s1 = inlined_call_operand.vmem [shape: s32[24,1], index: 1, kind: input, shape index: {}]   ;;  %s160_s0 = inlined_call_operand.vmem [shape: f32[16,32], index: 0, kind: input, shape index: {}]   ;;  %s161_s2 = inlined_call_operand.vmem [shape: f32[8,1], index: 2, kind: output, shape index: {}]  }
   0x1   :  { %118 = vset.pattern.permute.xlu0 %v124_v0  ;;  %v15_v1 = vld [vmem:[%s159_s1 + $0x10] sm:$0xff]  ;;  %119 = vset.pattern.permute.xlu1 %v124_v0  ;;  %v14_v2 = vld [vmem:[%s159_s1 + $0x8] sm:$0xff]  ;;  %v13_v3 = vld [vmem:[%s159_s1] sm:$0xff]  ;;  %vm77_vm4 = vcmask 261120   ;;  %vm100_vm6 = vcmask 7168  }
   0x2   :  { %23 = vperm.xlu0 %118, %v15_v1   ;;  %20 = vperm.xlu1 %119, %v14_v2   ;;  %v35_v4 = vld [vmem:[%s160_s0 + $0x8] sm:$0xff]  ;;  %v34_v5 = vld [vmem:[%s160_s0] sm:$0xff]  ;;  %v12_v7 = vand.u32 127, %v11_v6 }
   0x3   :  { %113 = vmatpush.msra.mxu2 %v35_v4  ;;  %60 = vmatpush.msra.mxu0 %v35_v4 }
   0x4   :  { %112 = vmatpush.msra.mxu1 %v35_v4 }
   0x5   :  { %115 = vmatpush.msra.mxu2 %v34_v5  ;;  %61 = vmatpush.msra.mxu0 %v34_v5 }
   0x6   :  { %114 = vmatpush.msra.mxu1 %v34_v5 }
   0xa   :  { %17 = vperm.xlu0 %118, %v13_v3  }
  0x74   :  { %v24_v8 = vpop.permute.xlu0 %23  ;;  %v21_v9 = vpop.permute.xlu1 %20 }
  0x75   :  { %vm27_vm1 = vcmp.eq.s32.totalorder %v12_v7, %v24_v8  ;;  %vm26_vm2 = vcmp.eq.s32.totalorder %v12_v7, %v21_v9 }
  0x76   :  { %v108_v11 = vsel %vm27_vm1, 1.0, %v125_v10  ;;  %v107_v12 = vsel %vm26_vm2, 1.0, %v125_v10 }
  0x77   :  { %111 = vmatmul.msk.f32.vlgmr.msra.gmra.mxu2 %vm36_vm0, %v108_v11  ;;  %110 = vmatmul.msk.f32.vlgmr.msra.gmra.mxu1 %vm36_vm0, %v107_v12 }
  0x7c   :  { %v18_v13 = vpop.permute.xlu0 %17 }
  0x7d   :  { %vm25_vm3 = vcmp.eq.s32.totalorder %v12_v7, %v18_v13 }
  0x7e   :  { %v106_v14 = vsel %vm25_vm3, 1.0, %v125_v10 }
  0x7f   :  { %109 = vmatmul.msk.f32.vlgmr.msra.gmra.mxu0 %vm36_vm0, %v106_v14 }
  0xf4   :  { %v66_v15 = vpop.f32.mrf.mxu1 }
  0xfa   :  { %v69_v16 = vpop.f32.mrf.mxu2 }
  0xfc   :  { %v63_v17 = vpop.f32.mrf.mxu0 }
  0xfd   :  { %v74_v18 = vsub.f32 %v63_v17, %v69_v16  ;;  %v72_v19 = vsub.f32 %v63_v17, %v66_v15 }
  0xff   :  { %v75_v20 = vmul.f32 %v74_v18, %v74_v18  ;;  %v73_v21 = vmul.f32 %v72_v19, %v72_v19 }
 0x101   :  { %v76_v22 = vsub.f32 %v73_v21, %v75_v20 }
 0x103   :  { %v78_v23 = vsel %vm77_vm4, %v76_v22, 0.0 }
 0x104   :  { %79 = vadd.xlane.f32.xlu1 %v78_v23 }
 0x177   :  { %v80_v24 = vpop.xlane.xlu1 %79 }
 0x178   :  { %v82_v25 = vsub.f32 0.0, %v80_v24  ;;  %v81_v37 = vmax.f32 %v80_v24, 0.0 }
 0x17a   :  { %v85_v26 = vand.u32 2147483647, %v82_v25  ;;  %vm83_vm7 = vcmp.ne.f32.partialorder %v82_v25, %v82_v25 }
 0x17c   :  { %v86_v27 = vsub.f32 0.0, %v85_v26 }
 0x17e   :  { %v87_v28 = vmul.f32 1.442695, %v86_v27 }
 0x180   :  { %120 = vpow2.f32 %v87_v28 }
 0x186   :  { %v121_v29 = vpop.eup %120 }
 0x187   :  { %v89_v30 = vadd.f32 1.0, %v121_v29  ;;  %v92_v31 = vmul.f32 -0.5, %v121_v29  ;;  %v95_v33 = vand.u32 2147483647, %v121_v29 }
 0x189   :  { %122 = vlog2.f32 %v89_v30  ;;  %v93_v32 = vadd.f32 1.0, %v92_v31  ;;  %vm96_vm5 = vcmp.lt.f32.partialorder %v95_v33, 0.0004427343 }
 0x18b   :  { %v94_v36 = vmul.f32 %v121_v29, %v93_v32 }
 0x18f   :  { %v123_v34 = vpop.eup %122 }
 0x190   :  { %v91_v35 = vmul.f32 0.6931472, %v123_v34 }
 0x192   :  { %v97_v38 = vsel %vm96_vm5, %v94_v36, %v91_v35 }
 0x193   :  { %v98_v39 = vadd.f32 %v97_v38, %v81_v37 }
 0x195   :  { %v99_v40 = vsel %vm83_vm7, %v80_v24, %v98_v39 }
 0x196   :  { %101 = vst.msk [vmem:[%s161_s2] sm:$0xff] %vm100_vm6, %v99_v40 }

</bundles_post_ra>
